<compile_context>
chip_gen: v5e
topology: v5e:2x2
jax: 0.10.0
libtpu: 0.0.40
codegen_flags: <defaults>
</compile_context>

<pallas_src>
import jax
import jax.numpy as jnp
import numpy as np
from jax.experimental import pallas as pl
from jax.experimental.pallas import tpu as pltpu


def make_positional_encoding(max_len: int, embedding_dim: int) -> jnp.ndarray:
    """Deterministic sinusoidal encoding, identical to PositionalEncoding.__init__."""
    assert embedding_dim % 2 == 0, "sinusoidal PE assumes an even embedding_dim"
    position = jnp.arange(max_len, dtype=jnp.float32)[:, None]             # (L, 1)
    i = jnp.arange(0, embedding_dim, 2, dtype=jnp.float32)[None, :] / embedding_dim
    exp_term = 10000.0 ** i                                                # (1, D/2)
    enc = jnp.zeros((max_len, embedding_dim), jnp.float32)
    enc = enc.at[:, 0::2].set(jnp.sin(position / exp_term))
    enc = enc.at[:, 1::2].set(jnp.cos(position / exp_term))
    return enc


def _make_embedding_kernel(vocab_size: int, seq_tile: int):
    """Build the kernel for a fixed vocab size / sequence tile."""

    def kernel(ids_ref, emb_hbm, pe_ref, out_ref, gather_buf, sems):
        # ids_ref   : (B, S)           int32, SMEM (scalar prefetch)
        # emb_hbm   : (V, D)           f32,   HBM  (memory_space=pl.ANY)
        # pe_ref    : (seq_tile, D)    f32,   VMEM (this sequence block's PE rows)
        # out_ref   : (1, seq_tile, D) f32,   VMEM
        # gather_buf: (seq_tile, D)    f32,   VMEM scratch (gathered rows)
        # sems      : (seq_tile,)      DMA semaphores
        b = pl.program_id(0)
        s0 = pl.program_id(1) * seq_tile

        # Issue all row-gather DMAs (they run concurrently), then wait for each.
        # Only the touched rows are read from HBM: seq_tile * D * 4 bytes.
        copies = []
        for i in range(seq_tile):           # static unroll; seq_tile is small
            tok = ids_ref[b, s0 + i]
            # Clamp: a bad id would be an unchecked OOB HBM read on TPU.
            tok = jnp.clip(tok, 0, vocab_size - 1)
            cp = pltpu.make_async_copy(
                emb_hbm.at[pl.ds(tok, 1), :],
                gather_buf.at[pl.ds(i, 1), :],
                sems.at[i])
            cp.start()
            copies.append(cp)
        for cp in copies:
            cp.wait()

        # One vector add + one fat store for the whole sequence tile.
        out_ref[0] = (gather_buf[...] + pe_ref[...]).astype(out_ref.dtype)
        # TODO(synk): nn.Dropout is identity at inference; training-mode dropout
        # would use pltpu.prng_seed + pltpu.prng_random_bits with 1/(1-p) scaling.
        # TODO(synk): for very long sequence tiles, switch the static unroll to
        # pl.loop with a double-buffered gather scratch; and store the table /
        # output as bf16 if downstream consumers accept it (halves HBM bytes).

    return kernel


def transformer_embedding(ids: jnp.ndarray,
                          emb_table: jnp.ndarray,
                          pos_encoding: jnp.ndarray,
                          *,
                          seq_tile: int = 256) -> jnp.ndarray:
    """out[b, s, :] = emb_table[ids[b, s], :] + pos_encoding[s, :]  (eval-mode dropout)."""
    B, S = ids.shape
    V, D = emb_table.shape
    L = pos_encoding.shape[0]
    assert S <= L, "seq_len must not exceed max_len of the positional encoding"

    ts = min(seq_tile, S)
    if S % ts != 0:
        ts = S  # TODO(synk): pad / mask a ragged tail block instead of one fat tile
    grid = (B, S // ts)

    itemsize = jnp.dtype(emb_table.dtype).itemsize
    cost = pl.CostEstimate(
        flops=B * S * D,                  # the add; gather is pure data movement
        transcendentals=0,
        bytes_accessed=(2 * B * S * D + S * D) * itemsize + B * S * 4)

    out = pl.pallas_call(
        _make_embedding_kernel(V, ts),
        out_shape=jax.ShapeDtypeStruct((B, S, D), emb_table.dtype),
        grid_spec=pltpu.PrefetchScalarGridSpec(
            num_scalar_prefetch=1,        # ids -> SMEM, visible to kernel + index_maps
            grid=grid,
            in_specs=[
                # Embedding table stays in HBM; kernel DMA-gathers touched rows.
                pl.BlockSpec(memory_space=pl.ANY),
                # PE rows for this sequence block only (no per-token duplication).
                pl.BlockSpec((ts, D), lambda b, s, ids_ref: (s, 0)),
            ],
            out_specs=pl.BlockSpec((1, ts, D), lambda b, s, ids_ref: (b, s, 0)),
            scratch_shapes=[
                pltpu.VMEM((ts, D), emb_table.dtype),   # gathered rows
                pltpu.SemaphoreType.DMA((ts,)),         # one sem per in-flight row DMA
            ]),
        compiler_params=pltpu.CompilerParams(
            # Both grid axes are independent -> megacore sharding on v7x,
            # neutral on single-TC v5e/v6e.
            dimension_semantics=("parallel", "parallel")),
        cost_estimate=cost,
    )(ids.astype(jnp.int32), emb_table, pos_encoding)

    return out


if __name__ == "__main__":
    # Small shapes consistent with the module's forward.
    vocab_size = 64
    max_len = 16
    embedding_dim = 32
    batch_size = 2
    seq_len = 8
    drop_prob = 0.1  # dropout is identity in eval mode

    key = jax.random.PRNGKey(0)
    k_emb, k_ids = jax.random.split(key)

    # nn.Embedding default init: N(0, 1)
    emb_table = jax.random.normal(k_emb, (vocab_size, embedding_dim), dtype=jnp.float32)
    pos_encoding = make_positional_encoding(max_len, embedding_dim)
    ids = jax.random.randint(k_ids, (batch_size, seq_len), 0, vocab_size, dtype=jnp.int32)

    out = transformer_embedding(ids, emb_table, pos_encoding)
    out = jax.block_until_ready(out)

    # Pure-JAX reference: tokenEmbedding(x) + positionalEncoding(x) (eval-mode dropout)
    ref = emb_table[ids] + pos_encoding[:seq_len, :][None, :, :]
    np.testing.assert_allclose(np.asarray(out), np.asarray(ref), rtol=1e-6, atol=1e-6)
    assert out.shape == (batch_size, seq_len, embedding_dim)
    assert out.dtype == jnp.float32

    print("KERNEL_OK")
</pallas_src>

<mosaic_0001>
module attributes {stable_mosaic.version = 11 : i64} {
  func.func @kernel(%arg0: i32, %arg1: i32, %arg2: memref<2x8xi32, #tpu.memory_space<smem>>, %arg3: memref<64x32xf32, #tpu.memory_space<any>>, %arg4: memref<8x32xf32, #tpu.memory_space<vmem>>, %arg5: memref<1x8x32xf32, #tpu.memory_space<vmem>>, %arg6: memref<8x32xf32, #tpu.memory_space<vmem>>, %arg7: memref<8x!tpu.dma_semaphore, #tpu.memory_space<semaphore_mem>>) attributes {dimension_semantics = [#tpu.dimension_semantics<parallel>, #tpu.dimension_semantics<parallel>], iteration_bounds = array<i64: 2, 1>, scalar_prefetch = 1 : i64, scratch_operands = 2 : i64, tpu.core_type = #tpu.core_type<tc>, window_params = [{}, {transform_indices = @transform_1, window_bounds = array<i64: 8, 32>}, {transform_indices = @transform_2, window_bounds = array<i64: 1, 8, 32>}]} {
    %c8_i32 = arith.constant 8 : i32
    %0 = arith.muli %arg1, %c8_i32 : i32
    %c0_i32 = arith.constant 0 : i32
    %1 = arith.addi %0, %c0_i32 : i32
    %2 = arith.index_cast %arg0 : i32 to index
    %3 = arith.index_cast %1 : i32 to index
    %4 = memref.load %arg2[%2, %3] : memref<2x8xi32, #tpu.memory_space<smem>>
    %c0_i32_0 = arith.constant 0 : i32
    %c63_i32 = arith.constant 63 : i32
    %5 = arith.maxsi %c0_i32_0, %4 : i32
    %6 = arith.minsi %c63_i32, %5 : i32
    %c0_i32_1 = arith.constant 0 : i32
    %c0_i32_2 = arith.constant 0 : i32
    %7 = tpu.memref_slice %arg3[%6, %c0_i32_2] : memref<64x32xf32, #tpu.memory_space<any>> -> memref<1x32xf32, #tpu.memory_space<any>>
    %c0_i32_3 = arith.constant 0 : i32
    %c0_i32_4 = arith.constant 0 : i32
    %8 = tpu.memref_slice %arg6[%c0_i32_3, %c0_i32_4] : memref<8x32xf32, #tpu.memory_space<vmem>> -> memref<1x32xf32, #tpu.memory_space<vmem>>
    %9 = tpu.memref_slice %arg7[%c0_i32_1] : memref<8x!tpu.dma_semaphore, #tpu.memory_space<semaphore_mem>> -> memref<1x!tpu.dma_semaphore, #tpu.memory_space<semaphore_mem>>
    %10 = tpu.memref_squeeze %9 : memref<1x!tpu.dma_semaphore, #tpu.memory_space<semaphore_mem>> -> memref<!tpu.dma_semaphore, #tpu.memory_space<semaphore_mem>>
    tpu.enqueue_dma source(%7 : memref<1x32xf32, #tpu.memory_space<any>>) target(%8 : memref<1x32xf32, #tpu.memory_space<vmem>>) target_semaphore(%10 : memref<!tpu.dma_semaphore, #tpu.memory_space<semaphore_mem>>)
    %c1_i32 = arith.constant 1 : i32
    %11 = arith.addi %0, %c1_i32 : i32
    %12 = arith.index_cast %arg0 : i32 to index
    %13 = arith.index_cast %11 : i32 to index
    %14 = memref.load %arg2[%12, %13] : memref<2x8xi32, #tpu.memory_space<smem>>
    %c0_i32_5 = arith.constant 0 : i32
    %c63_i32_6 = arith.constant 63 : i32
    %15 = arith.maxsi %c0_i32_5, %14 : i32
    %16 = arith.minsi %c63_i32_6, %15 : i32
    %c1_i32_7 = arith.constant 1 : i32
    %c0_i32_8 = arith.constant 0 : i32
    %17 = tpu.memref_slice %arg3[%16, %c0_i32_8] : memref<64x32xf32, #tpu.memory_space<any>> -> memref<1x32xf32, #tpu.memory_space<any>>
    %c1_i32_9 = arith.constant 1 : i32
    %c0_i32_10 = arith.constant 0 : i32
    %18 = tpu.memref_slice %arg6[%c1_i32_9, %c0_i32_10] : memref<8x32xf32, #tpu.memory_space<vmem>> -> memref<1x32xf32, #tpu.memory_space<vmem>>
    %19 = tpu.memref_slice %arg7[%c1_i32_7] : memref<8x!tpu.dma_semaphore, #tpu.memory_space<semaphore_mem>> -> memref<1x!tpu.dma_semaphore, #tpu.memory_space<semaphore_mem>>
    %20 = tpu.memref_squeeze %19 : memref<1x!tpu.dma_semaphore, #tpu.memory_space<semaphore_mem>> -> memref<!tpu.dma_semaphore, #tpu.memory_space<semaphore_mem>>
    tpu.enqueue_dma source(%17 : memref<1x32xf32, #tpu.memory_space<any>>) target(%18 : memref<1x32xf32, #tpu.memory_space<vmem>>) target_semaphore(%20 : memref<!tpu.dma_semaphore, #tpu.memory_space<semaphore_mem>>)
    %c2_i32 = arith.constant 2 : i32
    %21 = arith.addi %0, %c2_i32 : i32
    %22 = arith.index_cast %arg0 : i32 to index
    %23 = arith.index_cast %21 : i32 to index
    %24 = memref.load %arg2[%22, %23] : memref<2x8xi32, #tpu.memory_space<smem>>
    %c0_i32_11 = arith.constant 0 : i32
    %c63_i32_12 = arith.constant 63 : i32
    %25 = arith.maxsi %c0_i32_11, %24 : i32
    %26 = arith.minsi %c63_i32_12, %25 : i32
    %c2_i32_13 = arith.constant 2 : i32
    %c0_i32_14 = arith.constant 0 : i32
    %27 = tpu.memref_slice %arg3[%26, %c0_i32_14] : memref<64x32xf32, #tpu.memory_space<any>> -> memref<1x32xf32, #tpu.memory_space<any>>
    %c2_i32_15 = arith.constant 2 : i32
    %c0_i32_16 = arith.constant 0 : i32
    %28 = tpu.memref_slice %arg6[%c2_i32_15, %c0_i32_16] : memref<8x32xf32, #tpu.memory_space<vmem>> -> memref<1x32xf32, #tpu.memory_space<vmem>>
    %29 = tpu.memref_slice %arg7[%c2_i32_13] : memref<8x!tpu.dma_semaphore, #tpu.memory_space<semaphore_mem>> -> memref<1x!tpu.dma_semaphore, #tpu.memory_space<semaphore_mem>>
    %30 = tpu.memref_squeeze %29 : memref<1x!tpu.dma_semaphore, #tpu.memory_space<semaphore_mem>> -> memref<!tpu.dma_semaphore, #tpu.memory_space<semaphore_mem>>
    tpu.enqueue_dma source(%27 : memref<1x32xf32, #tpu.memory_space<any>>) target(%28 : memref<1x32xf32, #tpu.memory_space<vmem>>) target_semaphore(%30 : memref<!tpu.dma_semaphore, #tpu.memory_space<semaphore_mem>>)
    %c3_i32 = arith.constant 3 : i32
    %31 = arith.addi %0, %c3_i32 : i32
    %32 = arith.index_cast %arg0 : i32 to index
    %33 = arith.index_cast %31 : i32 to index
    %34 = memref.load %arg2[%32, %33] : memref<2x8xi32, #tpu.memory_space<smem>>
    %c0_i32_17 = arith.constant 0 : i32
    %c63_i32_18 = arith.constant 63 : i32
    %35 = arith.maxsi %c0_i32_17, %34 : i32
    %36 = arith.minsi %c63_i32_18, %35 : i32
    %c3_i32_19 = arith.constant 3 : i32
    %c0_i32_20 = arith.constant 0 : i32
    %37 = tpu.memref_slice %arg3[%36, %c0_i32_20] : memref<64x32xf32, #tpu.memory_space<any>> -> memref<1x32xf32, #tpu.memory_space<any>>
    %c3_i32_21 = arith.constant 3 : i32
    %c0_i32_22 = arith.constant 0 : i32
    %38 = tpu.memref_slice %arg6[%c3_i32_21, %c0_i32_22] : memref<8x32xf32, #tpu.memory_space<vmem>> -> memref<1x32xf32, #tpu.memory_space<vmem>>
    %39 = tpu.memref_slice %arg7[%c3_i32_19] : memref<8x!tpu.dma_semaphore, #tpu.memory_space<semaphore_mem>> -> memref<1x!tpu.dma_semaphore, #tpu.memory_space<semaphore_mem>>
    %40 = tpu.memref_squeeze %39 : memref<1x!tpu.dma_semaphore, #tpu.memory_space<semaphore_mem>> -> memref<!tpu.dma_semaphore, #tpu.memory_space<semaphore_mem>>
    tpu.enqueue_dma source(%37 : memref<1x32xf32, #tpu.memory_space<any>>) target(%38 : memref<1x32xf32, #tpu.memory_space<vmem>>) target_semaphore(%40 : memref<!tpu.dma_semaphore, #tpu.memory_space<semaphore_mem>>)
    %c4_i32 = arith.constant 4 : i32
    %41 = arith.addi %0, %c4_i32 : i32
    %42 = arith.index_cast %arg0 : i32 to index
    %43 = arith.index_cast %41 : i32 to index
    %44 = memref.load %arg2[%42, %43] : memref<2x8xi32, #tpu.memory_space<smem>>
    %c0_i32_23 = arith.constant 0 : i32
    %c63_i32_24 = arith.constant 63 : i32
    %45 = arith.maxsi %c0_i32_23, %44 : i32
    %46 = arith.minsi %c63_i32_24, %45 : i32
    %c4_i32_25 = arith.constant 4 : i32
    %c0_i32_26 = arith.constant 0 : i32
    %47 = tpu.memref_slice %arg3[%46, %c0_i32_26] : memref<64x32xf32, #tpu.memory_space<any>> -> memref<1x32xf32, #tpu.memory_space<any>>
    %c4_i32_27 = arith.constant 4 : i32
    %c0_i32_28 = arith.constant 0 : i32
    %48 = tpu.memref_slice %arg6[%c4_i32_27, %c0_i32_28] : memref<8x32xf32, #tpu.memory_space<vmem>> -> memref<1x32xf32, #tpu.memory_space<vmem>>
    %49 = tpu.memref_slice %arg7[%c4_i32_25] : memref<8x!tpu.dma_semaphore, #tpu.memory_space<semaphore_mem>> -> memref<1x!tpu.dma_semaphore, #tpu.memory_space<semaphore_mem>>
    %50 = tpu.memref_squeeze %49 : memref<1x!tpu.dma_semaphore, #tpu.memory_space<semaphore_mem>> -> memref<!tpu.dma_semaphore, #tpu.memory_space<semaphore_mem>>
    tpu.enqueue_dma source(%47 : memref<1x32xf32, #tpu.memory_space<any>>) target(%48 : memref<1x32xf32, #tpu.memory_space<vmem>>) target_semaphore(%50 : memref<!tpu.dma_semaphore, #tpu.memory_space<semaphore_mem>>)
    %c5_i32 = arith.constant 5 : i32
    %51 = arith.addi %0, %c5_i32 : i32
    %52 = arith.index_cast %arg0 : i32 to index
    %53 = arith.index_cast %51 : i32 to index
    %54 = memref.load %arg2[%52, %53] : memref<2x8xi32, #tpu.memory_space<smem>>
    %c0_i32_29 = arith.constant 0 : i32
    %c63_i32_30 = arith.constant 63 : i32
    %55 = arith.maxsi %c0_i32_29, %54 : i32
    %56 = arith.minsi %c63_i32_30, %55 : i32
    %c5_i32_31 = arith.constant 5 : i32
    %c0_i32_32 = arith.constant 0 : i32
    %57 = tpu.memref_slice %arg3[%56, %c0_i32_32] : memref<64x32xf32, #tpu.memory_space<any>> -> memref<1x32xf32, #tpu.memory_space<any>>
    %c5_i32_33 = arith.constant 5 : i32
    %c0_i32_34 = arith.constant 0 : i32
    %58 = tpu.memref_slice %arg6[%c5_i32_33, %c0_i32_34] : memref<8x32xf32, #tpu.memory_space<vmem>> -> memref<1x32xf32, #tpu.memory_space<vmem>>
    %59 = tpu.memref_slice %arg7[%c5_i32_31] : memref<8x!tpu.dma_semaphore, #tpu.memory_space<semaphore_mem>> -> memref<1x!tpu.dma_semaphore, #tpu.memory_space<semaphore_mem>>
    %60 = tpu.memref_squeeze %59 : memref<1x!tpu.dma_semaphore, #tpu.memory_space<semaphore_mem>> -> memref<!tpu.dma_semaphore, #tpu.memory_space<semaphore_mem>>
    tpu.enqueue_dma source(%57 : memref<1x32xf32, #tpu.memory_space<any>>) target(%58 : memref<1x32xf32, #tpu.memory_space<vmem>>) target_semaphore(%60 : memref<!tpu.dma_semaphore, #tpu.memory_space<semaphore_mem>>)
    %c6_i32 = arith.constant 6 : i32
    %61 = arith.addi %0, %c6_i32 : i32
    %62 = arith.index_cast %arg0 : i32 to index
    %63 = arith.index_cast %61 : i32 to index
    %64 = memref.load %arg2[%62, %63] : memref<2x8xi32, #tpu.memory_space<smem>>
    %c0_i32_35 = arith.constant 0 : i32
    %c63_i32_36 = arith.constant 63 : i32
    %65 = arith.maxsi %c0_i32_35, %64 : i32
    %66 = arith.minsi %c63_i32_36, %65 : i32
    %c6_i32_37 = arith.constant 6 : i32
    %c0_i32_38 = arith.constant 0 : i32
    %67 = tpu.memref_slice %arg3[%66, %c0_i32_38] : memref<64x32xf32, #tpu.memory_space<any>> -> memref<1x32xf32, #tpu.memory_space<any>>
    %c6_i32_39 = arith.constant 6 : i32
    %c0_i32_40 = arith.constant 0 : i32
    %68 = tpu.memref_slice %arg6[%c6_i32_39, %c0_i32_40] : memref<8x32xf32, #tpu.memory_space<vmem>> -> memref<1x32xf32, #tpu.memory_space<vmem>>
    %69 = tpu.memref_slice %arg7[%c6_i32_37] : memref<8x!tpu.dma_semaphore, #tpu.memory_space<semaphore_mem>> -> memref<1x!tpu.dma_semaphore, #tpu.memory_space<semaphore_mem>>
    %70 = tpu.memref_squeeze %69 : memref<1x!tpu.dma_semaphore, #tpu.memory_space<semaphore_mem>> -> memref<!tpu.dma_semaphore, #tpu.memory_space<semaphore_mem>>
    tpu.enqueue_dma source(%67 : memref<1x32xf32, #tpu.memory_space<any>>) target(%68 : memref<1x32xf32, #tpu.memory_space<vmem>>) target_semaphore(%70 : memref<!tpu.dma_semaphore, #tpu.memory_space<semaphore_mem>>)
    %c7_i32 = arith.constant 7 : i32
    %71 = arith.addi %0, %c7_i32 : i32
    %72 = arith.index_cast %arg0 : i32 to index
    %73 = arith.index_cast %71 : i32 to index
    %74 = memref.load %arg2[%72, %73] : memref<2x8xi32, #tpu.memory_space<smem>>
    %c0_i32_41 = arith.constant 0 : i32
    %c63_i32_42 = arith.constant 63 : i32
    %75 = arith.maxsi %c0_i32_41, %74 : i32
    %76 = arith.minsi %c63_i32_42, %75 : i32
    %c7_i32_43 = arith.constant 7 : i32
    %c0_i32_44 = arith.constant 0 : i32
    %77 = tpu.memref_slice %arg3[%76, %c0_i32_44] : memref<64x32xf32, #tpu.memory_space<any>> -> memref<1x32xf32, #tpu.memory_space<any>>
    %c7_i32_45 = arith.constant 7 : i32
    %c0_i32_46 = arith.constant 0 : i32
    %78 = tpu.memref_slice %arg6[%c7_i32_45, %c0_i32_46] : memref<8x32xf32, #tpu.memory_space<vmem>> -> memref<1x32xf32, #tpu.memory_space<vmem>>
    %79 = tpu.memref_slice %arg7[%c7_i32_43] : memref<8x!tpu.dma_semaphore, #tpu.memory_space<semaphore_mem>> -> memref<1x!tpu.dma_semaphore, #tpu.memory_space<semaphore_mem>>
    %80 = tpu.memref_squeeze %79 : memref<1x!tpu.dma_semaphore, #tpu.memory_space<semaphore_mem>> -> memref<!tpu.dma_semaphore, #tpu.memory_space<semaphore_mem>>
    tpu.enqueue_dma source(%77 : memref<1x32xf32, #tpu.memory_space<any>>) target(%78 : memref<1x32xf32, #tpu.memory_space<vmem>>) target_semaphore(%80 : memref<!tpu.dma_semaphore, #tpu.memory_space<semaphore_mem>>)
    %c0_i32_47 = arith.constant 0 : i32
    %c0_i32_48 = arith.constant 0 : i32
    %81 = tpu.memref_slice %arg3[%6, %c0_i32_48] : memref<64x32xf32, #tpu.memory_space<any>> -> memref<1x32xf32, #tpu.memory_space<any>>
    %c0_i32_49 = arith.constant 0 : i32
    %c0_i32_50 = arith.constant 0 : i32
    %82 = tpu.memref_slice %arg6[%c0_i32_49, %c0_i32_50] : memref<8x32xf32, #tpu.memory_space<vmem>> -> memref<1x32xf32, #tpu.memory_space<vmem>>
    %83 = tpu.memref_slice %arg7[%c0_i32_47] : memref<8x!tpu.dma_semaphore, #tpu.memory_space<semaphore_mem>> -> memref<1x!tpu.dma_semaphore, #tpu.memory_space<semaphore_mem>>
    %84 = tpu.memref_squeeze %83 : memref<1x!tpu.dma_semaphore, #tpu.memory_space<semaphore_mem>> -> memref<!tpu.dma_semaphore, #tpu.memory_space<semaphore_mem>>
    tpu.wait_dma2 semaphore(%84 : memref<!tpu.dma_semaphore, #tpu.memory_space<semaphore_mem>>) src(%81 : memref<1x32xf32, #tpu.memory_space<any>>) dst(%82 : memref<1x32xf32, #tpu.memory_space<vmem>>)
    %c1_i32_51 = arith.constant 1 : i32
    %c0_i32_52 = arith.constant 0 : i32
    %85 = tpu.memref_slice %arg3[%16, %c0_i32_52] : memref<64x32xf32, #tpu.memory_space<any>> -> memref<1x32xf32, #tpu.memory_space<any>>
    %c1_i32_53 = arith.constant 1 : i32
    %c0_i32_54 = arith.constant 0 : i32
    %86 = tpu.memref_slice %arg6[%c1_i32_53, %c0_i32_54] : memref<8x32xf32, #tpu.memory_space<vmem>> -> memref<1x32xf32, #tpu.memory_space<vmem>>
    %87 = tpu.memref_slice %arg7[%c1_i32_51] : memref<8x!tpu.dma_semaphore, #tpu.memory_space<semaphore_mem>> -> memref<1x!tpu.dma_semaphore, #tpu.memory_space<semaphore_mem>>
    %88 = tpu.memref_squeeze %87 : memref<1x!tpu.dma_semaphore, #tpu.memory_space<semaphore_mem>> -> memref<!tpu.dma_semaphore, #tpu.memory_space<semaphore_mem>>
    tpu.wait_dma2 semaphore(%88 : memref<!tpu.dma_semaphore, #tpu.memory_space<semaphore_mem>>) src(%85 : memref<1x32xf32, #tpu.memory_space<any>>) dst(%86 : memref<1x32xf32, #tpu.memory_space<vmem>>)
    %c2_i32_55 = arith.constant 2 : i32
    %c0_i32_56 = arith.constant 0 : i32
    %89 = tpu.memref_slice %arg3[%26, %c0_i32_56] : memref<64x32xf32, #tpu.memory_space<any>> -> memref<1x32xf32, #tpu.memory_space<any>>
    %c2_i32_57 = arith.constant 2 : i32
    %c0_i32_58 = arith.constant 0 : i32
    %90 = tpu.memref_slice %arg6[%c2_i32_57, %c0_i32_58] : memref<8x32xf32, #tpu.memory_space<vmem>> -> memref<1x32xf32, #tpu.memory_space<vmem>>
    %91 = tpu.memref_slice %arg7[%c2_i32_55] : memref<8x!tpu.dma_semaphore, #tpu.memory_space<semaphore_mem>> -> memref<1x!tpu.dma_semaphore, #tpu.memory_space<semaphore_mem>>
    %92 = tpu.memref_squeeze %91 : memref<1x!tpu.dma_semaphore, #tpu.memory_space<semaphore_mem>> -> memref<!tpu.dma_semaphore, #tpu.memory_space<semaphore_mem>>
    tpu.wait_dma2 semaphore(%92 : memref<!tpu.dma_semaphore, #tpu.memory_space<semaphore_mem>>) src(%89 : memref<1x32xf32, #tpu.memory_space<any>>) dst(%90 : memref<1x32xf32, #tpu.memory_space<vmem>>)
    %c3_i32_59 = arith.constant 3 : i32
    %c0_i32_60 = arith.constant 0 : i32
    %93 = tpu.memref_slice %arg3[%36, %c0_i32_60] : memref<64x32xf32, #tpu.memory_space<any>> -> memref<1x32xf32, #tpu.memory_space<any>>
    %c3_i32_61 = arith.constant 3 : i32
    %c0_i32_62 = arith.constant 0 : i32
    %94 = tpu.memref_slice %arg6[%c3_i32_61, %c0_i32_62] : memref<8x32xf32, #tpu.memory_space<vmem>> -> memref<1x32xf32, #tpu.memory_space<vmem>>
    %95 = tpu.memref_slice %arg7[%c3_i32_59] : memref<8x!tpu.dma_semaphore, #tpu.memory_space<semaphore_mem>> -> memref<1x!tpu.dma_semaphore, #tpu.memory_space<semaphore_mem>>
    %96 = tpu.memref_squeeze %95 : memref<1x!tpu.dma_semaphore, #tpu.memory_space<semaphore_mem>> -> memref<!tpu.dma_semaphore, #tpu.memory_space<semaphore_mem>>
    tpu.wait_dma2 semaphore(%96 : memref<!tpu.dma_semaphore, #tpu.memory_space<semaphore_mem>>) src(%93 : memref<1x32xf32, #tpu.memory_space<any>>) dst(%94 : memref<1x32xf32, #tpu.memory_space<vmem>>)
    %c4_i32_63 = arith.constant 4 : i32
    %c0_i32_64 = arith.constant 0 : i32
    %97 = tpu.memref_slice %arg3[%46, %c0_i32_64] : memref<64x32xf32, #tpu.memory_space<any>> -> memref<1x32xf32, #tpu.memory_space<any>>
    %c4_i32_65 = arith.constant 4 : i32
    %c0_i32_66 = arith.constant 0 : i32
    %98 = tpu.memref_slice %arg6[%c4_i32_65, %c0_i32_66] : memref<8x32xf32, #tpu.memory_space<vmem>> -> memref<1x32xf32, #tpu.memory_space<vmem>>
    %99 = tpu.memref_slice %arg7[%c4_i32_63] : memref<8x!tpu.dma_semaphore, #tpu.memory_space<semaphore_mem>> -> memref<1x!tpu.dma_semaphore, #tpu.memory_space<semaphore_mem>>
    %100 = tpu.memref_squeeze %99 : memref<1x!tpu.dma_semaphore, #tpu.memory_space<semaphore_mem>> -> memref<!tpu.dma_semaphore, #tpu.memory_space<semaphore_mem>>
    tpu.wait_dma2 semaphore(%100 : memref<!tpu.dma_semaphore, #tpu.memory_space<semaphore_mem>>) src(%97 : memref<1x32xf32, #tpu.memory_space<any>>) dst(%98 : memref<1x32xf32, #tpu.memory_space<vmem>>)
    %c5_i32_67 = arith.constant 5 : i32
    %c0_i32_68 = arith.constant 0 : i32
    %101 = tpu.memref_slice %arg3[%56, %c0_i32_68] : memref<64x32xf32, #tpu.memory_space<any>> -> memref<1x32xf32, #tpu.memory_space<any>>
    %c5_i32_69 = arith.constant 5 : i32
    %c0_i32_70 = arith.constant 0 : i32
    %102 = tpu.memref_slice %arg6[%c5_i32_69, %c0_i32_70] : memref<8x32xf32, #tpu.memory_space<vmem>> -> memref<1x32xf32, #tpu.memory_space<vmem>>
    %103 = tpu.memref_slice %arg7[%c5_i32_67] : memref<8x!tpu.dma_semaphore, #tpu.memory_space<semaphore_mem>> -> memref<1x!tpu.dma_semaphore, #tpu.memory_space<semaphore_mem>>
    %104 = tpu.memref_squeeze %103 : memref<1x!tpu.dma_semaphore, #tpu.memory_space<semaphore_mem>> -> memref<!tpu.dma_semaphore, #tpu.memory_space<semaphore_mem>>
    tpu.wait_dma2 semaphore(%104 : memref<!tpu.dma_semaphore, #tpu.memory_space<semaphore_mem>>) src(%101 : memref<1x32xf32, #tpu.memory_space<any>>) dst(%102 : memref<1x32xf32, #tpu.memory_space<vmem>>)
    %c6_i32_71 = arith.constant 6 : i32
    %c0_i32_72 = arith.constant 0 : i32
    %105 = tpu.memref_slice %arg3[%66, %c0_i32_72] : memref<64x32xf32, #tpu.memory_space<any>> -> memref<1x32xf32, #tpu.memory_space<any>>
    %c6_i32_73 = arith.constant 6 : i32
    %c0_i32_74 = arith.constant 0 : i32
    %106 = tpu.memref_slice %arg6[%c6_i32_73, %c0_i32_74] : memref<8x32xf32, #tpu.memory_space<vmem>> -> memref<1x32xf32, #tpu.memory_space<vmem>>
    %107 = tpu.memref_slice %arg7[%c6_i32_71] : memref<8x!tpu.dma_semaphore, #tpu.memory_space<semaphore_mem>> -> memref<1x!tpu.dma_semaphore, #tpu.memory_space<semaphore_mem>>
    %108 = tpu.memref_squeeze %107 : memref<1x!tpu.dma_semaphore, #tpu.memory_space<semaphore_mem>> -> memref<!tpu.dma_semaphore, #tpu.memory_space<semaphore_mem>>
    tpu.wait_dma2 semaphore(%108 : memref<!tpu.dma_semaphore, #tpu.memory_space<semaphore_mem>>) src(%105 : memref<1x32xf32, #tpu.memory_space<any>>) dst(%106 : memref<1x32xf32, #tpu.memory_space<vmem>>)
    %c7_i32_75 = arith.constant 7 : i32
    %c0_i32_76 = arith.constant 0 : i32
    %109 = tpu.memref_slice %arg3[%76, %c0_i32_76] : memref<64x32xf32, #tpu.memory_space<any>> -> memref<1x32xf32, #tpu.memory_space<any>>
    %c7_i32_77 = arith.constant 7 : i32
    %c0_i32_78 = arith.constant 0 : i32
    %110 = tpu.memref_slice %arg6[%c7_i32_77, %c0_i32_78] : memref<8x32xf32, #tpu.memory_space<vmem>> -> memref<1x32xf32, #tpu.memory_space<vmem>>
    %111 = tpu.memref_slice %arg7[%c7_i32_75] : memref<8x!tpu.dma_semaphore, #tpu.memory_space<semaphore_mem>> -> memref<1x!tpu.dma_semaphore, #tpu.memory_space<semaphore_mem>>
    %112 = tpu.memref_squeeze %111 : memref<1x!tpu.dma_semaphore, #tpu.memory_space<semaphore_mem>> -> memref<!tpu.dma_semaphore, #tpu.memory_space<semaphore_mem>>
    tpu.wait_dma2 semaphore(%112 : memref<!tpu.dma_semaphore, #tpu.memory_space<semaphore_mem>>) src(%109 : memref<1x32xf32, #tpu.memory_space<any>>) dst(%110 : memref<1x32xf32, #tpu.memory_space<vmem>>)
    %c0 = arith.constant 0 : index
    %c0_79 = arith.constant 0 : index
    %113 = vector.load %arg6[%c0, %c0_79] : memref<8x32xf32, #tpu.memory_space<vmem>>, vector<8x32xf32>
    %c0_80 = arith.constant 0 : index
    %c0_81 = arith.constant 0 : index
    %114 = vector.load %arg4[%c0_80, %c0_81] : memref<8x32xf32, #tpu.memory_space<vmem>>, vector<8x32xf32>
    %115 = arith.addf %113, %114 : vector<8x32xf32>
    %c0_82 = arith.constant 0 : index
    %c0_83 = arith.constant 0 : index
    %c0_84 = arith.constant 0 : index
    %116 = vector.load %arg5[%c0_82, %c0_83, %c0_84] : memref<1x8x32xf32, #tpu.memory_space<vmem>>, vector<1x8x32xf32>
    %117 = vector.shape_cast %116 : vector<1x8x32xf32> to vector<8x32xf32>
    %118 = vector.shape_cast %115 : vector<8x32xf32> to vector<1x8x32xf32>
    tpu.vector_store %arg5[%c0_82, %c0_83, %c0_84], %118 {strides = array<i32>} : memref<1x8x32xf32, #tpu.memory_space<vmem>>, vector<1x8x32xf32>,
    return
  }
  func.func @transform_1(%arg0: i32, %arg1: i32, %arg2: memref<2x8xi32, #tpu.memory_space<smem>>) -> (i32, i32) {
    %c0_i32 = arith.constant 0 : i32
    %c0_i32_0 = arith.constant 0 : i32
    return %arg1, %c0_i32 : i32, i32
  }
  func.func @transform_2(%arg0: i32, %arg1: i32, %arg2: memref<2x8xi32, #tpu.memory_space<smem>>) -> (i32, i32, i32) {
    %c0_i32 = arith.constant 0 : i32
    %c0_i32_0 = arith.constant 0 : i32
    return %arg0, %arg1, %c0_i32 : i32, i32, i32
  }
}

</mosaic_0001>

<bundles_post_ra>
// kernel: tpu_custom_call.1
= control target key start
LH: loop header
LB: loop body
LE: loop exit
PB: predicated region body
PF: predicated region fallthrough
CT: control target
= control target key end

     0   :  { %s987_s15 = smov [#allocation5]   ;;  %s1152_s0 = inlined_call_operand.vmem [shape: s32[2,8], index: 0, kind: input, shape index: {}]   ;;  %s1153_s1 = inlined_call_operand.vmem [shape: f32[64,32], index: 1, kind: input, shape index: {}]   ;;  %s1154_s2 = inlined_call_operand.vmem [shape: f32[16,32], index: 2, kind: input, shape index: {}]   ;;  %s1155_s3 = inlined_call_operand.hbm [shape: f32[2,8,32], index: 3, kind: output, shape index: {}]  }
   0x1   :  { %s9_s14 = sshll.u32 %s1152_s0, 4  ;;  %s10_s14 = int_to_ptr.vmem [resolvable:$true] %s9_s14 }
   0x2   :  { %12 = dma.vmem_to_smem %s10_s14, 32, %s987_s15, [#allocation4] }
   0x3   :  { %941 = dma.done.wait [#allocation4], 32 }
   0x4   :  { %942 = vsyncadd [#allocation4], 4294967264 }
   0x5   :  { %15 = sfence }
   0x6   :  { %16 = vsyncpa [#allocation7], 0 }
   0x7   :  { %18 = vsyncpa [#allocation7 + $0x1], 0  ;;  %s1011_s16 = smov 0   ;;  %s1013_s17 = smov 0  }
   0x8   :  { %s1015_s18 = smov 0   ;;  %s1017_s19 = smov 0  }
   0x9   :  { %s1019_s20 = smov 0   ;;  %s1021_s21 = smov 0  }
   0xa LB: > { %s739_s0 = sadd.s32 4294967295, %s985_s21   ;;  %s740_s22 = sadd.s32 4294967294, %s985_s21   ;;  %s985_s21 = sphi %s1021_s21, %s24_s21   ;;  %s981_s20 = sphi %s1019_s20, %s1162_s20   ;;  %s977_s19 = sphi %s1017_s19, %s1161_s19   ;;  %s973_s18 = sphi %s1015_s18, %s1160_s18   ;;  %s969_s17 = sphi %s1013_s17, %s1159_s17   ;;  %s965_s16 = sphi %s1011_s16, %s1158_s16  }
   0xb   : > { %s36_s23 = sadd.s32 1, %s981_s20  ;;  %s71_s24 = sadd.s32 1, %s973_s18 }
   0xc   : > { %p38_p0 = scmp.ge.s32.totalorder %s36_s23, 2  ;;  %p81_p1 = scmp.ne.s32.totalorder %s973_s18, %s969_s17 }
   0xd   : > { %p82_p2 = scmp.eq.s32.totalorder %s739_s0, 1  ;;  %p87_p3 = scmp.ne.s32.totalorder %s969_s17, %s965_s16 }
   0xe   : > { %s1164_s23 = smov (%p38_p0, %s36_s23), 0  ;;  %p88_p5 = scmp.eq.s32.totalorder %s740_s22, 1 }
   0xf   : > { %p1051_p4 = por %p82_p2, %p81_p1  ;;  %s66_s26 = ssub.s32 %s981_s20, %s1164_s23 }
  0x10   : > { %p743_p6 = scmp.ge.s32.totalorder %s985_s21, 1  ;;  %p69_p7 = scmp.eq.s32.totalorder %s66_s26, 0 }
  0x11   : > { %p1058_p8 = por %p88_p5, %p87_p3  ;;  %p113_p9 = scmp.lt.s32.totalorder %s985_s21, 3 }
  0x12   : > { %s1064_s28 = scalar_select %p69_p7, %s973_s18, %s71_s24  }
  0x13   : > { %p114_p10 = pnand %p743_p6, %p113_p9 }
  0x14   : > { %s129_s29 = sand.u32 (!%p114_p10), 1, %s969_s17   ;;  %s1068_s30 = sshll.u32 (!%p114_p10), %s977_s19, 7 }
  0x15   : > { %117 = sbr.rel (%p114_p10) target bundleno = 164 (0xa4), region = 24  ;;  %s1072_s4 = sshll.u32 (!%p114_p10), %s129_s29, 3 }
  0x16   : > { %s144_s5 = sld [smem:[#allocation5 + %s1068_s30]] (!%p114_p10)  ;;  %s131_s9 = scalar_lea.vmem (!%p114_p10), [#allocation6], %s1072_s4 }
  0x1c   : > { %p145_p11 = scmp.gt.s32.totalorder %s144_s5, 0  ;;  %p746_p12 = scmp.lt.s32.totalorder %s144_s5, 63 }
  0x1e   : > { %s1166_s5 = smov (!%p145_p11, %s144_s5), 0 }
  0x1f   : > { %s1168_s5 = smov (!%p746_p12, %s1166_s5), 63 }
  0x20   : > { %s149_s8 = scalar_lea.vmem %s1153_s1, %s1168_s5 }
  0x21   : > { %v164_v0 = vld [vmem:[%s149_s8] sm:$0x1] }
  0x22   : > { %165 = vst [vmem:[#allocation2] sm:$0x1] %v164_v0 }
  0x23   : > { %183 = vsyncadd [#allocation3], 16  ;;  %s191_s10 = sadd.s32 1, %s1068_s30 }
  0x24   : > { %s192_s11 = sld [smem:[#allocation5 + %s191_s10]] }
  0x2a   : > { %p193_p13 = scmp.gt.s32.totalorder %s192_s11, 0  ;;  %p752_p0 = scmp.lt.s32.totalorder %s192_s11, 63 }
  0x2c   : > { %s1170_s11 = smov (!%p193_p13, %s192_s11), 0 }
  0x2d   : > { %s1172_s11 = smov (!%p752_p0, %s1170_s11), 63 }
  0x2e   : > { %s197_s14 = scalar_lea.vmem %s1153_s1, %s1172_s11 }
  0x2f   : > { %v214_v1 = vld [vmem:[%s197_s14] sm:$0x1] }
  0x30   : > { %215 = vst [vmem:[#allocation2 + $0x1] sm:$0x1] %v214_v1 }
  0x31   : > { %233 = vsyncadd [#allocation3 + $0x1], 16  ;;  %s241_s15 = sadd.s32 2, %s1068_s30 }
  0x32   : > { %s242_s0 = sld [smem:[#allocation5 + %s241_s15]] }
  0x38   : > { %p243_p1 = scmp.gt.s32.totalorder %s242_s0, 0  ;;  %p758_p2 = scmp.lt.s32.totalorder %s242_s0, 63 }
  0x3a   : > { %s1174_s0 = smov (!%p243_p1, %s242_s0), 0 }
  0x3b   : > { %s1176_s0 = smov (!%p758_p2, %s1174_s0), 63 }
  0x3c   : > { %s247_s26 = scalar_lea.vmem %s1153_s1, %s1176_s0 }
  0x3d   : > { %v264_v2 = vld [vmem:[%s247_s26] sm:$0x1] }
  0x3e   : > { %265 = vst [vmem:[#allocation2 + $0x2] sm:$0x1] %v264_v2 }
  0x3f   : > { %283 = vsyncadd [#allocation3 + $0x2], 16  ;;  %s291_s5 = sadd.s32 3, %s1068_s30 }
  0x40   : > { %s292_s6 = sld [smem:[#allocation5 + %s291_s5]] }
  0x46   : > { %p293_p3 = scmp.gt.s32.totalorder %s292_s6, 0  ;;  %p764_p5 = scmp.lt.s32.totalorder %s292_s6, 63 }
  0x48   : > { %s1178_s6 = smov (!%p293_p3, %s292_s6), 0 }
  0x49   : > { %s1180_s6 = smov (!%p764_p5, %s1178_s6), 63 }
  0x4a   : > { %s297_s10 = scalar_lea.vmem %s1153_s1, %s1180_s6 }
  0x4b   : > { %v314_v3 = vld [vmem:[%s297_s10] sm:$0x1] }
  0x4c   : > { %315 = vst [vmem:[#allocation2 + $0x3] sm:$0x1] %v314_v3 }
  0x4d   : > { %333 = vsyncadd [#allocation3 + $0x3], 16  ;;  %s341_s11 = sadd.s32 4, %s1068_s30 }
  0x4e   : > { %s342_s12 = sld [smem:[#allocation5 + %s341_s11]] }
  0x54   : > { %p343_p6 = scmp.gt.s32.totalorder %s342_s12, 0  ;;  %p770_p7 = scmp.lt.s32.totalorder %s342_s12, 63 }
  0x56   : > { %s1182_s12 = smov (!%p343_p6, %s342_s12), 0 }
  0x57   : > { %s1184_s12 = smov (!%p770_p7, %s1182_s12), 63 }
  0x58   : > { %s347_s15 = scalar_lea.vmem %s1153_s1, %s1184_s12 }
  0x59   : > { %v364_v4 = vld [vmem:[%s347_s15] sm:$0x1] }
  0x5a   : > { %365 = vst [vmem:[#allocation2 + $0x4] sm:$0x1] %v364_v4 }
  0x5b   : > { %383 = vsyncadd [#allocation3 + $0x4], 16  ;;  %s391_s0 = sadd.s32 5, %s1068_s30 }
  0x5c   : > { %s392_s22 = sld [smem:[#allocation5 + %s391_s0]] }
  0x62   : > { %p393_p9 = scmp.gt.s32.totalorder %s392_s22, 0  ;;  %p776_p10 = scmp.lt.s32.totalorder %s392_s22, 63 }
  0x64   : > { %s1186_s22 = smov (!%p393_p9, %s392_s22), 0 }
  0x65   : > { %s1188_s22 = smov (!%p776_p10, %s1186_s22), 63 }
  0x66   : > { %s397_s5 = scalar_lea.vmem %s1153_s1, %s1188_s22 }
  0x67   : > { %v414_v5 = vld [vmem:[%s397_s5] sm:$0x1] }
  0x68   : > { %415 = vst [vmem:[#allocation2 + $0x5] sm:$0x1] %v414_v5 }
  0x69   : > { %433 = vsyncadd [#allocation3 + $0x5], 16  ;;  %s441_s6 = sadd.s32 6, %s1068_s30 }
  0x6a   : > { %s442_s7 = sld [smem:[#allocation5 + %s441_s6]] }
  0x70   : > { %p443_p11 = scmp.gt.s32.totalorder %s442_s7, 0  ;;  %p782_p12 = scmp.lt.s32.totalorder %s442_s7, 63 }
  0x72   : > { %s1190_s7 = smov (!%p443_p11, %s442_s7), 0 }
  0x73   : > { %s1192_s7 = smov (!%p782_p12, %s1190_s7), 63 }
  0x74   : > { %s447_s11 = scalar_lea.vmem %s1153_s1, %s1192_s7 }
  0x75   : > { %v464_v6 = vld [vmem:[%s447_s11] sm:$0x1] }
  0x76   : > { %465 = vst [vmem:[#allocation2 + $0x6] sm:$0x1] %v464_v6 }
  0x77   : > { %483 = vsyncadd [#allocation3 + $0x6], 16  ;;  %s491_s12 = sadd.s32 7, %s1068_s30 }
  0x78   : > { %s492_s13 = sld [smem:[#allocation5 + %s491_s12]] }
  0x7e   : > { %p493_p13 = scmp.gt.s32.totalorder %s492_s13, 0  ;;  %p788_p0 = scmp.lt.s32.totalorder %s492_s13, 63 }
  0x80   : > { %s1194_s13 = smov (!%p493_p13, %s492_s13), 0 }
  0x81   : > { %s1196_s13 = smov (!%p788_p0, %s1194_s13), 63 }
  0x82   : > { %s497_s0 = scalar_lea.vmem %s1153_s1, %s1196_s13 }
  0x83   : > { %v514_v7 = vld [vmem:[%s497_s0] sm:$0x1] }
  0x84   : > { %515 = vst [vmem:[#allocation2 + $0x7] sm:$0x1] %v514_v7 }
  0x85   : > { %533 = vsyncadd [#allocation3 + $0x7], 16 }
  0x86   : > { %943 = dma.done.wait [#allocation3], 16 }
  0x87   : > { %944 = vsyncadd [#allocation3], 4294967280 }
  0x88   : > { %945 = dma.done.wait [#allocation3 + $0x1], 16 }
  0x89   : > { %946 = vsyncadd [#allocation3 + $0x1], 4294967280 }
  0x8a   : > { %947 = dma.done.wait [#allocation3 + $0x2], 16 }
  0x8b   : > { %948 = vsyncadd [#allocation3 + $0x2], 4294967280 }
  0x8c   : > { %949 = dma.done.wait [#allocation3 + $0x3], 16 }
  0x8d   : > { %950 = vsyncadd [#allocation3 + $0x3], 4294967280 }
  0x8e   : > { %951 = dma.done.wait [#allocation3 + $0x4], 16 }
  0x8f   : > { %952 = vsyncadd [#allocation3 + $0x4], 4294967280 }
  0x90   : > { %953 = dma.done.wait [#allocation3 + $0x5], 16 }
  0x91   : > { %954 = vsyncadd [#allocation3 + $0x5], 4294967280 }
  0x92   : > { %955 = dma.done.wait [#allocation3 + $0x6], 16 }
  0x93   : > { %956 = vsyncadd [#allocation3 + $0x6], 4294967280 }
  0x94   : > { %957 = dma.done.wait [#allocation3 + $0x7], 16 }
  0x95   : > { %958 = vsyncadd [#allocation3 + $0x7], 4294967280  ;;  %s794_s30 = sshll.u32 %s977_s19, 3  ;;  %s570_s5 = sshll.u32 %s131_s9, 4  ;;  %v551_v8 = vld [vmem:[#allocation2] sm:$0xff]  ;;  %vm554_vm0 = vcmask 261120   ;;  %s571_s5 = int_to_ptr.vmem [resolvable:$true] %s570_s5 }
  0x96   : > { %s568_s26 = scalar_lea.hbm %s1155_s3, %s794_s30  ;;  %v552_v9 = vld [vmem:[%s1154_s2] sm:$0xff]  ;;  %s557_s19 = scalar_lea.sflag [#allocation7], %s129_s29 }
  0x97   : > { %s572_s6 = sshll.u32 %s568_s26, 4  ;;  %v553_v10 = vadd.f32 %v552_v9, %v551_v8  ;;  %s909_s14 = scalar_lea.hbm %s1155_s3, 16  ;;  %s573_s6 = int_to_ptr.hbm [resolvable:$true] %s572_s6 }
  0x98   : > { %s903_s10 = sshra.s32 %s573_s6, 4  ;;  %s904_s10 = int_to_ptr.hbm [resolvable:$true] %s903_s10 }
  0x99   : > { %555 = vst.msk [vmem:[%s131_s9] sm:$0xff] %vm554_vm0, %v553_v10  ;;  %s905_s11 = scalar_lea.hbm %s904_s10, 8  ;;  %p910_p5 = scmp.lt.s32.totalorder %s904_s10, %s1155_s3 }
  0x9a   : > { %p906_p1 = scmp.ne.s32.totalorder %s904_s10, %s905_s11  ;;  %p911_p6 = scmp.lt.s32.totalorder %s909_s14, %s905_s11 }
  0x9c   : > { %p907_p2 = pnand %p906_p1, %p1051_p4  ;;  %p912_p7 = por %p911_p6, %p910_p5 }
  0x9e   : > { %p908_p3 = pneg %p907_p2 }
  0xa0   : > { %p913_p9 = pnand %p912_p7, %p908_p3 }
  0xa2   : > { %916 = shalt.err (!%p913_p9)
}
  0xa3   : > { %821 = dma.vmem_to_hbm [thread:$0]  (%p1051_p4), %s571_s5, 128, %s573_s6, %s557_s19  }
  0xa4 PF: > { %p827_p10 = scmp.ge.s32.totalorder %s985_s21, 2  ;;  %s584_s29 = sand.u32 1, %s965_s16  }
  0xa5   : > { %s585_s4 = scalar_lea.sflag [#allocation7], %s584_s29 }
  0xa6   : > { %p824_p11 = pnand %p827_p10, %p1058_p8 }
  0xa8   : > { %p825_p12 = pneg %p824_p11 }
  0xaa   : > { %960 = dma.done.wait (%p825_p12), %s585_s4, 128  }
  0xab   : > { %962 = vsyncadd (%p825_p12), %s585_s4, 4294967168  ;;  %s24_s21 = sadd.s32 1, %s985_s21   ;;  %s1158_s16 = smov %s969_s17 }
  0xac   : > { %p21_p13 = scmp.ge.s32.totalorder %s24_s21, 4   ;;  %s1159_s17 = smov %s973_s18 }
  0xad   : > { %s1160_s18 = smov %s1064_s28  ;;  %s1161_s19 = smov %s981_s20 }
  0xae   : > { %s1162_s20 = smov %s1164_s23  ;;  %23 = sbr.rel (!%p21_p13) target bundleno = 10 (0xa), region = 360 }
  0xb3   :  { %591 = vsyncpa [#allocation7], 1 }
  0xb4   :  { %593 = vsyncpa [#allocation7 + $0x1], 1 }
  0xb5   :  { %594 = vsyncmov [#allocation3] }
  0xb8   :  { %s595_s25 = vpop.sfrf %594 }
  0xb9   :  { %p797_p4 = scmp.ne.s32.totalorder %s595_s25, 0 }
  0xbb   :  { %599 = shalt.err (%p797_p4)  }
  0xbc   :  { %601 = vsyncmov [#allocation3 + $0x1] }
  0xbf   :  { %s602_s27 = vpop.sfrf %601 }
  0xc0   :  { %p798_p8 = scmp.ne.s32.totalorder %s602_s27, 0 }
  0xc2   :  { %606 = shalt.err (%p798_p8)  }
  0xc3   :  { %608 = vsyncmov [#allocation3 + $0x2] }
  0xc6   :  { %s609_s9 = vpop.sfrf %608 }
  0xc7   :  { %p799_p0 = scmp.ne.s32.totalorder %s609_s9, 0 }
  0xc9   :  { %613 = shalt.err (%p799_p0)  }
  0xca   :  { %615 = vsyncmov [#allocation3 + $0x3] }
  0xcd   :  { %s616_s28 = vpop.sfrf %615 }
  0xce   :  { %p800_p1 = scmp.ne.s32.totalorder %s616_s28, 0 }
  0xd0   :  { %620 = shalt.err (%p800_p1)  }
  0xd1   :  { %622 = vsyncmov [#allocation3 + $0x4] }
  0xd4   :  { %s623_s21 = vpop.sfrf %622 }
  0xd5   :  { %p801_p2 = scmp.ne.s32.totalorder %s623_s21, 0 }
  0xd7   :  { %627 = shalt.err (%p801_p2)  }
  0xd8   :  { %629 = vsyncmov [#allocation3 + $0x5] }
  0xdb   :  { %s630_s1 = vpop.sfrf %629 }
  0xdc   :  { %p802_p3 = scmp.ne.s32.totalorder %s630_s1, 0 }
  0xde   :  { %634 = shalt.err (%p802_p3)  }
  0xdf   :  { %636 = vsyncmov [#allocation3 + $0x6] }
  0xe2   :  { %s637_s2 = vpop.sfrf %636 }
  0xe3   :  { %p803_p5 = scmp.ne.s32.totalorder %s637_s2, 0 }
  0xe5   :  { %641 = shalt.err (%p803_p5)  }
  0xe6   :  { %643 = vsyncmov [#allocation3 + $0x7] }
  0xe9   :  { %s644_s3 = vpop.sfrf %643 }
  0xea   :  { %p804_p6 = scmp.ne.s32.totalorder %s644_s3, 0 }
  0xec   :  { %648 = shalt.err (%p804_p6)  }

</bundles_post_ra>
